<compile_context>
chip_gen: v7x
topology: tpu7x:2x2x1
jax: 0.10.0
libtpu: 0.0.40
codegen_flags: <defaults>
</compile_context>

<pallas_src>
import functools

import jax
import jax.numpy as jnp
from jax.experimental import pallas as pl
from jax.experimental.pallas import tpu as pltpu


def _round_up(x, m):
    return ((x + m - 1) // m) * m


def _gather_rows_kernel(tile_t, num_tokens, vocab_size,
                        idx_ref, w_hbm, o_ref, copy_sems):
    """Gather one tile of embedding rows straight into the output block.

    idx_ref   : (T,) int32 in SMEM (scalar prefetch) -- all token indices.
    w_hbm     : (V, E) weight table, left in HBM (memory_space=pl.ANY).
    o_ref     : (tile_t, E) VMEM output block; rows are DMA'd directly into it.
    copy_sems : (tile_t,) DMA semaphores, one per in-flight row copy.
    """
    base = pl.program_id(0) * tile_t

    # Issue all row DMAs first (concurrent, data-dependent HBM row addresses).
    # All SMEM index reads happen before any .wait().
    @pl.loop(0, tile_t)
    def _issue(i):
        # The last tile may overhang num_tokens: clamp the token position so
        # the SMEM read stays in-bounds (the overhanging output rows are
        # masked by Pallas on write-back anyway).
        tok = jnp.minimum(base + i, num_tokens - 1)
        row = idx_ref[tok]
        # Clamp the row index so the data-dependent HBM DMA can never go OOB.
        # (torch.nn.functional.embedding would raise on out-of-range indices.)
        row = jnp.minimum(jnp.maximum(row, 0), vocab_size - 1)
        pltpu.make_async_copy(
            w_hbm.at[pl.ds(row, 1), :],     # (1, E) row in HBM
            o_ref.at[pl.ds(i, 1), :],       # (1, E) row of the output block
            copy_sems.at[i],
        ).start()

    # ... then wait for all of them (wait needs only the sem + transfer size).
    @pl.loop(0, tile_t)
    def _drain(i):
        pltpu.make_async_copy(
            w_hbm.at[pl.ds(0, 1), :],
            o_ref.at[pl.ds(i, 1), :],
            copy_sems.at[i],
        ).wait()


def build_full_weight(weight_shards):
    """Single-chip realization of gather() along the embedding dim.

    A row-gather commutes with a column-concat, so concatenating the per-rank
    column shards once (at weight-build / load time, NOT per forward call)
    and doing a full-table lookup is equivalent to per-shard lookup followed
    by an all-gather along E.
    """
    # TODO(synk): on a real multi-device gang, gather(y, gang) is a remote-DMA
    # all-gather (make_async_remote_copy ring); here it is the one-time concat.
    if len(weight_shards) == 1:
        return weight_shards[0]
    return jnp.concatenate(weight_shards, axis=1)


def _gather_chunk(idx, weight_full, tile_t, vmem_budget_bytes):
    V, E = weight_full.shape
    dtype = weight_full.dtype
    itemsize = jnp.dtype(dtype).itemsize
    T = int(idx.shape[0])

    # Tile selection: as large as the double-buffered output block budget
    # allows (capped at 512 rows), rounded to the 8-sublane granule and never
    # larger than needed for this chunk.
    if tile_t is None:
        t = vmem_budget_bytes // (2 * E * itemsize)
        t = min(int(t), 512)
    else:
        t = int(tile_t)
    t = min(t, _round_up(T, 8))
    t = max(8, (t // 8) * 8)

    num_tiles = pl.cdiv(T, t)

    out_block_bytes = t * E * itemsize
    # Double-buffered output block + slack; capped at 64 MiB (v7x physical).
    vmem_limit = int(min(max(2 * out_block_bytes + (4 << 20), 32 << 20), 64 << 20))

    kernel = functools.partial(_gather_rows_kernel, t, T, V)

    cost = pl.CostEstimate(
        flops=0,
        transcendentals=0,
        bytes_accessed=2 * T * E * itemsize + 4 * T,   # read rows + write out + read idx
    )

    return pl.pallas_call(
        kernel,
        out_shape=jax.ShapeDtypeStruct((T, E), dtype),
        grid_spec=pltpu.PrefetchScalarGridSpec(
            num_scalar_prefetch=1,                     # idx -> SMEM
            grid=(num_tiles,),                         # one step per T-tile
            in_specs=[
                pl.BlockSpec(memory_space=pl.ANY),     # weight stays in HBM
            ],
            out_specs=pl.BlockSpec((t, E), lambda i, idx_ref: (i, 0)),
            scratch_shapes=[
                pltpu.SemaphoreType.DMA((t,)),         # per-row DMA sems
            ],
        ),
        compiler_params=pltpu.CompilerParams(
            # T-tiles are independent: shards across the 2 TensorCores on v7x.
            dimension_semantics=("parallel",),
            vmem_limit_bytes=vmem_limit,
        ),
        cost_estimate=cost,
    )(idx, weight_full)


def sharded_embedding_forward(x, weight_full, *, tile_t=None,
                              vmem_budget_bytes=32 << 20,
                              max_tokens_per_call=65536):
    """ShardedEmbedding.forward on the pre-gathered (full-E) weight table.

    x           : integer indices, any shape.
    weight_full : (V, E) table (from build_full_weight, built once).
    Returns (*x.shape, E) in the weight dtype.
    """
    # TODO(synk): reduce_on_backward(x, gang) is a gradient-only collective;
    # it is the identity in the forward pass, so no kernel-side work is needed.
    V, E = weight_full.shape
    orig_shape = x.shape
    idx = x.reshape(-1).astype(jnp.int32)
    T = int(idx.shape[0])

    # Chunk over tokens so the scalar-prefetched index vector stays well
    # within SMEM even for very long sequences.
    if T <= max_tokens_per_call:
        out = _gather_chunk(idx, weight_full, tile_t, vmem_budget_bytes)
    else:
        parts = []
        for start in range(0, T, max_tokens_per_call):
            stop = min(start + max_tokens_per_call, T)
            parts.append(
                _gather_chunk(idx[start:stop], weight_full, tile_t,
                              vmem_budget_bytes))
        out = jnp.concatenate(parts, axis=0)

    return out.reshape(*orig_shape, E)


if __name__ == "__main__":
    # Small, module-consistent shapes.
    num_embeddings = 64      # V
    embedding_dim = 256      # E (multiple of 128 and of gang_size)
    gang_size = 2            # simulated tensor-parallel world size
    pad_idx = 0
    batch, seq = 2, 8

    key = jax.random.PRNGKey(0)
    k_w, k_x, k_x2 = jax.random.split(key, 3)

    # StandardEmbedding.reset_parameters: normal init, zero the pad_idx row.
    weight_ref = jax.random.normal(
        k_w, (num_embeddings, embedding_dim), dtype=jnp.float32
    )
    weight_ref = weight_ref.at[pad_idx].set(0.0)

    # Per-rank column shards, as ShardedEmbedding._copy_weight would hold them.
    es = embedding_dim // gang_size
    weight_shards = tuple(
        weight_ref[:, r * es:(r + 1) * es] for r in range(gang_size)
    )

    # gather() realized once, outside the per-call forward path.
    weight_full = build_full_weight(weight_shards)
    weight_full = jax.block_until_ready(weight_full)

    # --- Test 1: (batch, seq) indices, auto tile size (single exact block). --
    x = jax.random.randint(k_x, (batch, seq), 0, num_embeddings, dtype=jnp.int32)
    x = x.at[0, 0].set(pad_idx)

    y = sharded_embedding_forward(x, weight_full)
    y = jax.block_until_ready(y)

    y_ref = jnp.take(weight_ref, x, axis=0)
    assert y.shape == (batch, seq, embedding_dim), y.shape
    assert jnp.allclose(y, y_ref, atol=1e-6), float(jnp.max(jnp.abs(y - y_ref)))
    assert bool(jnp.all(y[0, 0] == 0.0))  # pad_idx row is zero

    # --- Test 2: token count not a multiple of the tile, multi-step grid, ----
    # --- masked partial output block (no pad / out[:T] round trip). ----------
    x2 = jax.random.randint(k_x2, (3, 5), 0, num_embeddings, dtype=jnp.int32)
    y2 = sharded_embedding_forward(x2, weight_full, tile_t=8)
    y2 = jax.block_until_ready(y2)
    y2_ref = jnp.take(weight_ref, x2, axis=0)
    assert y2.shape == (3, 5, embedding_dim), y2.shape
    assert jnp.allclose(y2, y2_ref, atol=1e-6), float(jnp.max(jnp.abs(y2 - y2_ref)))

    print("KERNEL_OK")
</pallas_src>

<mosaic_0001>
module attributes {stable_mosaic.version = 11 : i64} {
  func.func @_gather_rows_kernel(%arg0: i32, %arg1: memref<16xi32, #tpu.memory_space<smem>>, %arg2: memref<64x256xf32, #tpu.memory_space<any>>, %arg3: memref<16x256xf32, #tpu.memory_space<vmem>>, %arg4: memref<16x!tpu.dma_semaphore, #tpu.memory_space<semaphore_mem>>) attributes {dimension_semantics = [#tpu.dimension_semantics<parallel>], iteration_bounds = array<i64: 1>, scalar_prefetch = 1 : i64, scratch_operands = 1 : i64, tpu.core_type = #tpu.core_type<tc>, window_params = [{}, {transform_indices = @transform_1, window_bounds = array<i64: 16, 256>}]} {
    %c16_i32 = arith.constant 16 : i32
    %0 = arith.muli %arg0, %c16_i32 : i32
    %c0_i32 = arith.constant 0 : i32
    %c16_i32_0 = arith.constant 16 : i32
    %1 = arith.addi %c0_i32, %c16_i32_0 : i32
    %c1_i32 = arith.constant 1 : i32
    scf.for %arg5 = %c0_i32 to %1 step %c1_i32  : i32 {
      %c1_i32_6 = arith.constant 1 : i32
      %3 = arith.muli %arg5, %c1_i32_6 : i32
      %c0_i32_7 = arith.constant 0 : i32
      %4 = arith.addi %c0_i32_7, %3 : i32
      %5 = arith.addi %0, %4 : i32
      %c15_i32 = arith.constant 15 : i32
      %6 = arith.minsi %5, %c15_i32 : i32
      %7 = arith.index_cast %6 : i32 to index
      %8 = memref.load %arg1[%7] : memref<16xi32, #tpu.memory_space<smem>>
      %c0_i32_8 = arith.constant 0 : i32
      %9 = arith.maxsi %8, %c0_i32_8 : i32
      %c63_i32 = arith.constant 63 : i32
      %10 = arith.minsi %9, %c63_i32 : i32
      %c0_i32_9 = arith.constant 0 : i32
      %11 = tpu.memref_slice %arg2[%10, %c0_i32_9] : memref<64x256xf32, #tpu.memory_space<any>> -> memref<1x256xf32, #tpu.memory_space<any>>
      %c0_i32_10 = arith.constant 0 : i32
      %12 = tpu.memref_slice %arg3[%4, %c0_i32_10] : memref<16x256xf32, #tpu.memory_space<vmem>> -> memref<1x256xf32, #tpu.memory_space<vmem>>
      %13 = tpu.memref_slice %arg4[%4] : memref<16x!tpu.dma_semaphore, #tpu.memory_space<semaphore_mem>> -> memref<1x!tpu.dma_semaphore, #tpu.memory_space<semaphore_mem>>
      %14 = tpu.memref_squeeze %13 : memref<1x!tpu.dma_semaphore, #tpu.memory_space<semaphore_mem>> -> memref<!tpu.dma_semaphore, #tpu.memory_space<semaphore_mem>>
      tpu.enqueue_dma source(%11 : memref<1x256xf32, #tpu.memory_space<any>>) target(%12 : memref<1x256xf32, #tpu.memory_space<vmem>>) target_semaphore(%14 : memref<!tpu.dma_semaphore, #tpu.memory_space<semaphore_mem>>)
    }
    %c16_i32_1 = arith.constant 16 : i32
    %c0_i32_2 = arith.constant 0 : i32
    %c16_i32_3 = arith.constant 16 : i32
    %2 = arith.addi %c0_i32_2, %c16_i32_3 : i32
    %c1_i32_4 = arith.constant 1 : i32
    scf.for %arg5 = %c0_i32_2 to %2 step %c1_i32_4  : i32 {
      %c1_i32_6 = arith.constant 1 : i32
      %3 = arith.muli %arg5, %c1_i32_6 : i32
      %c0_i32_7 = arith.constant 0 : i32
      %4 = arith.addi %c0_i32_7, %3 : i32
      %c0_i32_8 = arith.constant 0 : i32
      %c0_i32_9 = arith.constant 0 : i32
      %5 = tpu.memref_slice %arg2[%c0_i32_8, %c0_i32_9] : memref<64x256xf32, #tpu.memory_space<any>> -> memref<1x256xf32, #tpu.memory_space<any>>
      %c0_i32_10 = arith.constant 0 : i32
      %6 = tpu.memref_slice %arg3[%4, %c0_i32_10] : memref<16x256xf32, #tpu.memory_space<vmem>> -> memref<1x256xf32, #tpu.memory_space<vmem>>
      %7 = tpu.memref_slice %arg4[%4] : memref<16x!tpu.dma_semaphore, #tpu.memory_space<semaphore_mem>> -> memref<1x!tpu.dma_semaphore, #tpu.memory_space<semaphore_mem>>
      %8 = tpu.memref_squeeze %7 : memref<1x!tpu.dma_semaphore, #tpu.memory_space<semaphore_mem>> -> memref<!tpu.dma_semaphore, #tpu.memory_space<semaphore_mem>>
      tpu.wait_dma2 semaphore(%8 : memref<!tpu.dma_semaphore, #tpu.memory_space<semaphore_mem>>) src(%5 : memref<1x256xf32, #tpu.memory_space<any>>) dst(%6 : memref<1x256xf32, #tpu.memory_space<vmem>>)
    }
    %c16_i32_5 = arith.constant 16 : i32
    return
  }
  func.func @transform_1(%arg0: i32, %arg1: memref<16xi32, #tpu.memory_space<smem>>) -> (i32, i32) {
    %c0_i32 = arith.constant 0 : i32
    %c0_i32_0 = arith.constant 0 : i32
    return %arg0, %c0_i32 : i32, i32
  }
}

</mosaic_0001>

<bundles_post_ra>
// kernel: tpu_custom_call.1
= control target key start
LH: loop header
LB: loop body
LE: loop exit
PB: predicated region body
PF: predicated region fallthrough
CT: control target
= control target key end

     0   :  { %s414_s0 = inlined_call_operand.hbm [shape: s32[16], index: 0, kind: input, shape index: {}]   ;;  %s415_s1 = inlined_call_operand.hbm [shape: f32[64,256], index: 1, kind: input, shape index: {}]   ;;  %s416_s2 = inlined_call_operand.hbm [shape: f32[16,256], index: 2, kind: output, shape index: {}]  }
   0x1   :  { %s248_s11 = scalar_lea.hbm %s414_s0, 16 }
   0x2   :  { %p249_p0 = scmp.ne.s32.totalorder %s414_s0, %s248_s11  ;;  %p252_p1 = scmp.lt.u32.totalorder %s248_s11, %s414_s0 }
   0x4   :  { %p254_p2 = pnand %p252_p1, %p249_p0 }
   0x6   :  { %257 = shalt.err (!%p254_p2)  }
   0x7   :  { %s326_s16 = smov [#allocation4]  }
   0x8   :  { %8 = dma.hbm_to_smem %s414_s0, 16, %s326_s16, [#allocation3] }
   0x9   :  { %312 = dma.done.wait [#allocation3], 16 }
   0xa   :  { %313 = vsyncadd [#allocation3], 4294967280 }
   0xb   :  { %10 = sfence }
   0xc   :  { %11 = vsyncpa [#allocation6], 0  ;;  %s359_s19 = smov 0  }
   0xd LB: > { %p20_p3 = scmp.lt.s32.totalorder %s320_s19, 15  ;;  %s33_s20 = sshrl.u32 %s320_s19, 3  ;;  %s320_s19 = sphi %s359_s19, %s18_s19  }
   0xe   : > { %s34_s0 = sand.u32 7, %s320_s19   ;;  %s207_s23 = sshll.u32 %s33_s20, 4 }
   0xf   : > { %s21_s21 = scalar_select %p20_p3, %s320_s19, 15 }
  0x10   : > { %s36_s24 = sadd.s32 %s207_s23, %s34_s0  ;;  %s38_s7 = scalar_lea.sflag [#allocation2], %s320_s19 }
  0x11   : > { %s22_s22 = sld [smem:[#allocation4 + %s21_s21]]  ;;  %s37_s25 = scalar_lea.vmem [#allocation5], %s36_s24 }
  0x12   : > { %s40_s26 = sshll.u32 %s37_s25, 4  ;;  %s260_s11 = scalar_lea.hbm %s415_s1, 2048  ;;  %s368_s26 = int_to_ptr.vmem [resolvable:$true] %s40_s26 }
  0x17   : > { %p23_p4 = scmp.gt.s32.totalorder %s22_s22, 0  ;;  %p200_p5 = scmp.lt.s32.totalorder %s22_s22, 63 }
  0x19   : > { %s418_s22 = smov (!%p23_p4, %s22_s22), 0 }
  0x1a   : > { %s420_s22 = smov (!%p200_p5, %s418_s22), 63 }
  0x1b   : > { %s27_s27 = sshrl.u32 %s420_s22, 3  ;;  %s28_s28 = sand.u32 7, %s420_s22  }
  0x1c   : > { %s205_s29 = sshll.u32 %s27_s27, 4 }
  0x1d   : > { %s30_s30 = sadd.s32 %s205_s29, %s28_s28 }
  0x1e   : > { %s206_s3 = sshll.u32 %s30_s30, 4 }
  0x1f   : > { %s373_s6 = scalar_lea.hbm %s415_s1, %s206_s3 }
  0x20   : > { %s258_s8 = scalar_lea.hbm %s373_s6, 32  ;;  %p261_p7 = scmp.lt.u32.totalorder %s373_s6, %s415_s1 }
  0x21   : > { %p259_p6 = scmp.ne.s32.totalorder %s373_s6, %s258_s8  ;;  %p262_p8 = scmp.lt.u32.totalorder %s260_s11, %s258_s8 }
  0x22   : > { %p264_p10 = scmp.lt.u32.totalorder %s258_s8, %s373_s6 }
  0x23   : > { %p263_p9 = por %p262_p8, %p261_p7 }
  0x25   : > { %p265_p11 = por %p264_p10, %p263_p9 }
  0x27   : > { %p266_p12 = pnand %p265_p11, %p259_p6 }
  0x29   : > { %269 = shalt.err (!%p266_p12)  }
  0x2a   : > { %s270_s14 = scalar_lea.vmem %s368_s26, 32  ;;  %s327_s15 = smov [#allocation5]  }
  0x2b   : > { %p271_p13 = scmp.ne.s32.totalorder %s368_s26, %s270_s14  ;;  %s272_s16 = sshll.u32 %s327_s15, 4  ;;  %s388_s16 = int_to_ptr.vmem [resolvable:$false] %s272_s16 }
  0x2c   : > { %s274_s17 = scalar_lea.vmem %s388_s16, 512  ;;  %p275_p0 = scmp.lt.s32.totalorder %s368_s26, %s388_s16 }
  0x2d   : > { %p276_p1 = scmp.lt.s32.totalorder %s274_s17, %s270_s14 }
  0x2f   : > { %p277_p2 = por %p276_p1, %p275_p0 }
  0x31   : > { %p278_p3 = pnand %p277_p2, %p271_p13 }
  0x33   : > { %281 = shalt.err (!%p278_p3)  }
  0x34   : > { %s328_s18 = smov 128   ;;  %s329_s20 = smov 1  }
  0x35   : > { %43 = dma.hbm_to_vmem [thread:$0]  %s373_s6, 32, %s368_s26, %s38_s7, %s328_s18, %s328_s18, %s329_s20 }
  0x36   : > { %s18_s19 = sadd.s32 1, %s320_s19  }
  0x37   : > { %p15_p4 = scmp.ge.s32.totalorder %s18_s19, 16  }
  0x38   :  { %s322_s21 = smov (%p15_p4), 0  }
  0x39   :  { %17 = sbr.rel (!%p15_p4) target bundleno = 13 (0xd), region = 53 }
  0x40 LB: > { %s50_s22 = scalar_lea.sflag [#allocation2], %s324_s21  ;;  %s324_s21 = sphi %s322_s21, %s49_s21  }
  0x41   : > { %314 = dma.done.wait %s50_s22, 32 }
  0x42   : > { %315 = vsyncadd %s50_s22, 4294967264  ;;  %s49_s21 = sadd.s32 1, %s324_s21  }
  0x43   : > { %p46_p5 = scmp.ge.s32.totalorder %s49_s21, 16  }
  0x44   :  { %p283_p6 = scmp.ne.s32.totalorder (%p46_p5), %s388_s16, %s274_s17  ;;  %p287_p7 = scmp.lt.s32.totalorder (%p46_p5), %s388_s16, %s388_s16 }
  0x45   :  { %48 = sbr.rel (!%p46_p5) target bundleno = 64 (0x40), region = 64  ;;  %p288_p8 = scmp.lt.s32.totalorder (%p46_p5), %s274_s17, %s274_s17 }
  0x47   :  { %p289_p9 = por (%p46_p5), %p288_p8, %p287_p7 }
  0x49   :  { %p290_p10 = pnand (%p46_p5), %p289_p9, %p283_p6 }
  0x4c   :  { %293 = shalt.err (!%p290_p10)
}
  0x4d   :  { %s294_s0 = scalar_lea.hbm %s416_s2, 512 }
  0x4e   :  { %p295_p11 = scmp.ne.s32.totalorder %s416_s2, %s294_s0  ;;  %p298_p12 = scmp.lt.u32.totalorder %s294_s0, %s416_s2 }
  0x50   :  { %p300_p13 = pnand %p298_p12, %p295_p11 }
  0x52   :  { %303 = shalt.err (!%p300_p13)
}
  0x53   :  { %s330_s27 = smov 256   ;;  %s331_s28 = smov 16  }
  0x54   :  { %65 = dma.vmem_to_hbm [thread:$0]  %s388_s16, 512, %s416_s2, [#allocation6], %s330_s27, %s330_s27, %s331_s28  }
  0x55   :  { %316 = dma.done.wait [#allocation6], 512  }
  0x56   :  { %317 = vsyncadd [#allocation6], 4294966784 }
  0x57   :  { %69 = vsyncpa [#allocation6], 1 }
  0x58   :  { %70 = vsyncmov [#allocation2] }
  0x5b   :  { %s71_s3 = vpop.sfrf %70 }
  0x5c   :  { %p208_p0 = scmp.ne.s32.totalorder %s71_s3, 0 }
  0x5e   :  { %75 = shalt.err (%p208_p0)  }
  0x5f   :  { %77 = vsyncmov [#allocation2 + $0x1] }
  0x62   :  { %s78_s4 = vpop.sfrf %77 }
  0x63   :  { %p209_p1 = scmp.ne.s32.totalorder %s78_s4, 0 }
  0x65   :  { %82 = shalt.err (%p209_p1)  }
  0x66   :  { %84 = vsyncmov [#allocation2 + $0x2] }
  0x69   :  { %s85_s5 = vpop.sfrf %84 }
  0x6a   :  { %p210_p2 = scmp.ne.s32.totalorder %s85_s5, 0 }
  0x6c   :  { %89 = shalt.err (%p210_p2)  }
  0x6d   :  { %91 = vsyncmov [#allocation2 + $0x3] }
  0x70   :  { %s92_s6 = vpop.sfrf %91 }
  0x71   :  { %p211_p3 = scmp.ne.s32.totalorder %s92_s6, 0 }
  0x73   :  { %96 = shalt.err (%p211_p3)  }
  0x74   :  { %98 = vsyncmov [#allocation2 + $0x4] }
  0x77   :  { %s99_s2 = vpop.sfrf %98 }
  0x78   :  { %p212_p4 = scmp.ne.s32.totalorder %s99_s2, 0 }
  0x7a   :  { %103 = shalt.err (%p212_p4)  }
  0x7b   :  { %105 = vsyncmov [#allocation2 + $0x5] }
  0x7e   :  { %s106_s7 = vpop.sfrf %105 }
  0x7f   :  { %p213_p5 = scmp.ne.s32.totalorder %s106_s7, 0 }
  0x81   :  { %110 = shalt.err (%p213_p5)  }
  0x82   :  { %112 = vsyncmov [#allocation2 + $0x6] }
  0x85   :  { %s113_s8 = vpop.sfrf %112 }
  0x86   :  { %p214_p6 = scmp.ne.s32.totalorder %s113_s8, 0 }
  0x88   :  { %117 = shalt.err (%p214_p6)  }
  0x89   :  { %119 = vsyncmov [#allocation2 + $0x7] }
  0x8c   :  { %s120_s9 = vpop.sfrf %119 }
  0x8d   :  { %p215_p7 = scmp.ne.s32.totalorder %s120_s9, 0 }
  0x8f   :  { %124 = shalt.err (%p215_p7)  }
  0x90   :  { %126 = vsyncmov [#allocation2 + $0x8] }
  0x93   :  { %s127_s10 = vpop.sfrf %126 }
  0x94   :  { %p216_p8 = scmp.ne.s32.totalorder %s127_s10, 0 }
  0x96   :  { %131 = shalt.err (%p216_p8)  }
  0x97   :  { %133 = vsyncmov [#allocation2 + $0x9] }
  0x9a   :  { %s134_s11 = vpop.sfrf %133 }
  0x9b   :  { %p217_p9 = scmp.ne.s32.totalorder %s134_s11, 0 }
  0x9d   :  { %138 = shalt.err (%p217_p9)  }
  0x9e   :  { %140 = vsyncmov [#allocation2 + $0xa] }
  0xa1   :  { %s141_s12 = vpop.sfrf %140 }
  0xa2   :  { %p218_p10 = scmp.ne.s32.totalorder %s141_s12, 0 }
  0xa4   :  { %145 = shalt.err (%p218_p10)  }
  0xa5   :  { %147 = vsyncmov [#allocation2 + $0xb] }
  0xa8   :  { %s148_s13 = vpop.sfrf %147 }
  0xa9   :  { %p219_p11 = scmp.ne.s32.totalorder %s148_s13, 0 }
  0xab   :  { %152 = shalt.err (%p219_p11)  }
  0xac   :  { %154 = vsyncmov [#allocation2 + $0xc] }
  0xaf   :  { %s155_s14 = vpop.sfrf %154 }
  0xb0   :  { %p220_p12 = scmp.ne.s32.totalorder %s155_s14, 0 }
  0xb2   :  { %159 = shalt.err (%p220_p12)  }
  0xb3   :  { %161 = vsyncmov [#allocation2 + $0xd] }
  0xb6   :  { %s162_s15 = vpop.sfrf %161 }
  0xb7   :  { %p221_p13 = scmp.ne.s32.totalorder %s162_s15, 0 }
  0xb9   :  { %166 = shalt.err (%p221_p13)  }
  0xba   :  { %168 = vsyncmov [#allocation2 + $0xe] }
  0xbd   :  { %s169_s16 = vpop.sfrf %168 }
  0xbe   :  { %p222_p0 = scmp.ne.s32.totalorder %s169_s16, 0 }
  0xc0   :  { %173 = shalt.err (%p222_p0)  }
  0xc1   :  { %175 = vsyncmov [#allocation2 + $0xf] }
  0xc4   :  { %s176_s17 = vpop.sfrf %175 }
  0xc5   :  { %p223_p1 = scmp.ne.s32.totalorder %s176_s17, 0 }
  0xc7   :  { %180 = shalt.err (%p223_p1)  }

</bundles_post_ra>
